<compile_context>
chip_gen: v7x
topology: tpu7x:2x2x1
jax: 0.10.0
libtpu: 0.0.40
codegen_flags: <defaults>
</compile_context>

<pallas_src>
import functools
import math

import numpy as np
import jax
import jax.numpy as jnp
from jax.experimental import pallas as pl
from jax.experimental.pallas import tpu as pltpu


# ---------------------------------------------------------------------------
# "register_buffer": sin/cos table built once at init, outside the jitted fwd.
# Kept in PyTorch's (max_len, 1, d_model) layout so the in-kernel batch
# broadcast is a stride-0 read of the size-1 sublane axis.
# ---------------------------------------------------------------------------
def make_pe(max_len, d_model, dtype=jnp.float32):
    position = np.arange(max_len, dtype=np.float32)[:, None]                 # (L, 1)
    div_term = np.exp(np.arange(0, d_model, 2, dtype=np.float32)
                      * (-math.log(10000.0) / d_model))                      # (D/2,)
    pe = np.zeros((max_len, d_model), np.float32)
    pe[:, 0::2] = np.sin(position * div_term)
    pe[:, 1::2] = np.cos(position * div_term)
    return jnp.asarray(pe[:, None, :], dtype)                                # (L, 1, D)


# ---------------------------------------------------------------------------
# Generation-aware VMEM budgeting + (seq, batch) tile selection.
# ---------------------------------------------------------------------------
def _device_budget():
    """Returns (per-step VMEM budget, vmem_limit_bytes or None, min seq grid steps)."""
    try:
        kind = jax.devices()[0].device_kind.lower()
    except Exception:
        kind = ""
    if "v7" in kind:                       # 64 MiB physical / 32 MiB scoped; 2 TCs
        return 16 * 1024 * 1024, 48 * 1024 * 1024, 2
    if "v5" in kind or "v6" in kind:       # 128 MiB physical
        return 24 * 1024 * 1024, 64 * 1024 * 1024, 1
    return 16 * 1024 * 1024, None, 1       # unknown / interpret backend


def _choose_tiles(S, B, D, itemsize, budget_bytes, n_streams, min_seq_steps=1):
    """Largest (ts, tb) divisors of (S, B) -- each a multiple of 8 or the full
    extent (to satisfy the (8,128) rule on the last two block dims) -- whose
    double-buffered working set fits the budget."""
    def cands(n):
        return [d for d in range(n, 0, -1) if n % d == 0 and (d % 8 == 0 or d == n)]
    ts_c = cands(S)
    tb_c = cands(B)
    ts_pref = [t for t in ts_c if S // t >= min_seq_steps] or ts_c

    def step_bytes(ts, tb):
        # double-buffered x / out (/ mask) blocks + the (ts, 1, D) pe slab
        return 2 * itemsize * ts * D * (n_streams * tb + 1)

    for tb in tb_c:
        for ts in ts_pref:
            if step_bytes(ts, tb) <= budget_bytes:
                return ts, tb
    return ts_pref[-1], tb_c[-1]


# ---------------------------------------------------------------------------
# Kernels
# ---------------------------------------------------------------------------
def pe_add_kernel(x_ref, pe_ref, o_ref):
    # x_ref: (ts, tb, D); pe_ref: (ts, 1, D) -> stride-0 broadcast over batch.
    o_ref[...] = (x_ref[...] + pe_ref[...].astype(x_ref.dtype)).astype(o_ref.dtype)


def pe_add_dropout_mask_kernel(x_ref, pe_ref, keep_ref, o_ref, *, scale):
    # Portable training path: keep-mask streamed in, select+scale fused here.
    y = x_ref[...] + pe_ref[...].astype(x_ref.dtype)
    o_ref[...] = (y * keep_ref[...] * jnp.asarray(scale, x_ref.dtype)).astype(o_ref.dtype)


def pe_add_dropout_prng_kernel(seed_ref, x_ref, pe_ref, o_ref, *, p):
    # Fully fused dropout via the hardware PRNG (real TPU only: prng_seed has
    # no CPU/interpret lowering).  Single combined scalar seed per tile.
    pltpu.prng_seed(seed_ref[0]
                    + pl.program_id(0) * pl.num_programs(1)
                    + pl.program_id(1))
    y = x_ref[...] + pe_ref[...].astype(x_ref.dtype)
    bits = pltpu.bitcast(pltpu.prng_random_bits(y.shape), jnp.uint32)
    thresh = jnp.uint32(min(int(round(p * 2**32)), 2**32 - 1))
    keep = bits >= thresh                   # integer threshold: no float-uniform math
    scale = jnp.asarray(1.0 / (1.0 - p), x_ref.dtype)
    o_ref[...] = jnp.where(keep, y * scale, jnp.zeros_like(y)).astype(o_ref.dtype)


# ---------------------------------------------------------------------------
# Forward wrapper
# ---------------------------------------------------------------------------
def positional_encoding_forward(x, pe, *, dropout_p=0.1, train=False,
                                dropout_key=None, seed=0,
                                use_onchip_prng=False, tiles=None):
    """x: (S, B, D); pe: (max_len, 1, D) buffer from make_pe."""
    S, B, D = x.shape
    L, one, D2 = pe.shape
    assert one == 1 and D2 == D and S <= L
    assert 0.0 <= dropout_p < 1.0
    do_dropout = train and dropout_p > 0.0

    budget, vmem_limit, min_seq_steps = _device_budget()
    itemsize = jnp.dtype(x.dtype).itemsize
    n_streams = 3 if (do_dropout and not use_onchip_prng) else 2   # x, out (, mask)
    if tiles is None:
        ts, tb = _choose_tiles(S, B, D, itemsize, budget, n_streams, min_seq_steps)
    else:
        ts, tb = tiles
    assert S % ts == 0 and B % tb == 0

    grid = (S // ts, B // tb)
    x_spec = pl.BlockSpec((ts, tb, D), lambda i, j: (i, j, 0))
    pe_spec = pl.BlockSpec((ts, 1, D), lambda i, j: (i, 0, 0))     # only pe[:S] is DMA'd
    out_shape = jax.ShapeDtypeStruct((S, B, D), x.dtype)

    cp = dict(dimension_semantics=("parallel", "parallel"))
    if vmem_limit is not None:
        cp["vmem_limit_bytes"] = vmem_limit
    compiler_params = pltpu.CompilerParams(**cp)

    if not do_dropout:
        return pl.pallas_call(
            pe_add_kernel,
            out_shape=out_shape,
            grid=grid,
            in_specs=[x_spec, pe_spec],
            out_specs=x_spec,
            input_output_aliases={0: 0},            # out reuses x's HBM buffer
            compiler_params=compiler_params,
        )(x, pe)

    if use_onchip_prng:
        # Preferred on real TPU: no mask traffic at all.
        kernel = functools.partial(pe_add_dropout_prng_kernel, p=float(dropout_p))
        return pl.pallas_call(
            kernel,
            out_shape=out_shape,
            grid_spec=pltpu.PrefetchScalarGridSpec(
                num_scalar_prefetch=1,
                grid=grid,
                in_specs=[pl.BlockSpec((ts, tb, D), lambda i, j, s: (i, j, 0)),
                          pl.BlockSpec((ts, 1, D), lambda i, j, s: (i, 0, 0))],
                out_specs=pl.BlockSpec((ts, tb, D), lambda i, j, s: (i, j, 0)),
            ),
            input_output_aliases={1: 0},            # account for scalar-prefetch arg
            compiler_params=compiler_params,
        )(jnp.asarray([seed], jnp.int32), x, pe)

    # Portable training path: threefry keep-mask built outside the kernel,
    # select + 1/(1-p) scaling fused in-kernel.
    # TODO(synk): on real TPU prefer use_onchip_prng=True to avoid streaming the mask.
    if dropout_key is None:
        dropout_key = jax.random.PRNGKey(seed)
    keep = jax.random.bernoulli(dropout_key, 1.0 - dropout_p, (S, B, D)).astype(x.dtype)
    kernel = functools.partial(pe_add_dropout_mask_kernel,
                               scale=1.0 / (1.0 - dropout_p))
    return pl.pallas_call(
        kernel,
        out_shape=out_shape,
        grid=grid,
        in_specs=[x_spec, pe_spec, x_spec],
        out_specs=x_spec,
        input_output_aliases={0: 0},
        compiler_params=compiler_params,
    )(x, pe, keep)


# ---------------------------------------------------------------------------
# Self-test (small shapes)
# ---------------------------------------------------------------------------
if __name__ == "__main__":
    S, B, D = 16, 2, 32            # seq, batch, d_model
    MAX_LEN, P = 64, 0.1

    key = jax.random.PRNGKey(0)
    x = jax.random.normal(key, (S, B, D), jnp.float32)
    pe = make_pe(MAX_LEN, D, jnp.float32)          # built once at "init", outside jit

    ref = np.asarray(x) + np.asarray(pe)[:S]       # (S,B,D) + (S,1,D) broadcast

    # --- eval mode: dropout is identity ---
    fwd_eval = jax.jit(functools.partial(positional_encoding_forward,
                                         dropout_p=P, train=False))
    out = jax.block_until_ready(fwd_eval(x, pe))
    assert out.shape == (S, B, D)
    np.testing.assert_allclose(np.asarray(out), ref, rtol=1e-6, atol=1e-6)

    # --- training mode: dropout mask fused into the kernel ---
    dkey = jax.random.PRNGKey(1234)
    fwd_train = jax.jit(functools.partial(positional_encoding_forward,
                                          dropout_p=P, train=True,
                                          dropout_key=dkey))
    out_t = np.asarray(jax.block_until_ready(fwd_train(x, pe)))
    assert out_t.shape == (S, B, D)
    keep = np.asarray(jax.random.bernoulli(dkey, 1.0 - P, (S, B, D))).astype(np.float32)
    ref_t = ref * keep / (1.0 - P)
    np.testing.assert_allclose(out_t, ref_t, rtol=1e-5, atol=1e-5)

    print("KERNEL_OK")
</pallas_src>

<mosaic_0001>
module attributes {stable_mosaic.version = 11 : i64} {
  func.func @pe_add_kernel(%arg0: i32, %arg1: i32, %arg2: memref<16x2x32xf32, #tpu.memory_space<vmem>>, %arg3: memref<16x1x32xf32, #tpu.memory_space<vmem>>, %arg4: memref<16x2x32xf32, #tpu.memory_space<vmem>>) attributes {dimension_semantics = [#tpu.dimension_semantics<parallel>, #tpu.dimension_semantics<parallel>], iteration_bounds = array<i64: 1, 1>, scalar_prefetch = 0 : i64, scratch_operands = 0 : i64, tpu.core_type = #tpu.core_type<tc>, window_params = [{transform_indices = @transform_0, window_bounds = array<i64: 16, 2, 32>}, {transform_indices = @transform_1, window_bounds = array<i64: 16, 1, 32>}, {transform_indices = @transform_2, window_bounds = array<i64: 16, 2, 32>}]} {
    %c0 = arith.constant 0 : index
    %c0_0 = arith.constant 0 : index
    %c0_1 = arith.constant 0 : index
    %0 = vector.load %arg2[%c0, %c0_0, %c0_1] : memref<16x2x32xf32, #tpu.memory_space<vmem>>, vector<16x2x32xf32>
    %c0_2 = arith.constant 0 : index
    %c0_3 = arith.constant 0 : index
    %c0_4 = arith.constant 0 : index
    %1 = vector.load %arg3[%c0_2, %c0_3, %c0_4] : memref<16x1x32xf32, #tpu.memory_space<vmem>>, vector<16x1x32xf32>
    %2 = vector.broadcast %1 : vector<16x1x32xf32> to vector<16x2x32xf32>
    %3 = arith.addf %0, %2 : vector<16x2x32xf32>
    %c0_5 = arith.constant 0 : index
    %c0_6 = arith.constant 0 : index
    %c0_7 = arith.constant 0 : index
    %4 = vector.load %arg4[%c0_5, %c0_6, %c0_7] : memref<16x2x32xf32, #tpu.memory_space<vmem>>, vector<16x2x32xf32>
    tpu.vector_store %arg4[%c0_5, %c0_6, %c0_7], %3 {strides = array<i32>} : memref<16x2x32xf32, #tpu.memory_space<vmem>>, vector<16x2x32xf32>,
    return
  }
  func.func @transform_0(%arg0: i32, %arg1: i32) -> (i32, i32, i32) {
    %c0_i32 = arith.constant 0 : i32
    %c0_i32_0 = arith.constant 0 : i32
    return %arg0, %arg1, %c0_i32 : i32, i32, i32
  }
  func.func @transform_1(%arg0: i32, %arg1: i32) -> (i32, i32, i32) {
    %c0_i32 = arith.constant 0 : i32
    %c0_i32_0 = arith.constant 0 : i32
    %c0_i32_1 = arith.constant 0 : i32
    return %arg0, %c0_i32, %c0_i32_0 : i32, i32, i32
  }
  func.func @transform_2(%arg0: i32, %arg1: i32) -> (i32, i32, i32) {
    %c0_i32 = arith.constant 0 : i32
    %c0_i32_0 = arith.constant 0 : i32
    return %arg0, %arg1, %c0_i32 : i32, i32, i32
  }
}

</mosaic_0001>

<bundles_post_ra>
// kernel: positional_encoding_forward.1
= control target key start
LH: loop header
LB: loop body
LE: loop exit
PB: predicated region body
PF: predicated region fallthrough
CT: control target
= control target key end

     0   :  { %7 = vsyncpa [#allocation3], 0  ;;  %s388_s0 = inlined_call_operand.hbm [shape: f32[16,2,32], index: 0, kind: input, shape index: {}, may-alias: {0,2}]   ;;  %s389_s1 = inlined_call_operand.vmem [shape: f32[64,1,32], index: 1, kind: input, shape index: {}]   ;;  %s390_s2 = inlined_call_operand.hbm [shape: f32[16,2,32], index: 2, kind: output, shape index: {}, may-alias: {0,2}]  }
   0x1   :  { %8 = vsyncpa [#allocation4], 0  ;;  %s272_s9 = smov [#allocation2]   ;;  %s224_s13 = scalar_lea.hbm %s388_s0, 512 }
   0x2   :  { %s14_s10 = sshll.u32 %s272_s9, 4  ;;  %p225_p0 = scmp.ne.s32.totalorder %s388_s0, %s224_s13  ;;  %s15_s10 = int_to_ptr.vmem [resolvable:$true] %s14_s10 }
   0x3   :  { %p228_p1 = scmp.lt.u32.totalorder %s224_s13, %s388_s0 }
   0x5   :  { %p230_p2 = pnand %p228_p1, %p225_p0 }
   0x7   :  { %233 = shalt.err (!%p230_p2)
}
   0x8   :  { %s234_s18 = scalar_lea.vmem %s15_s10, 512  ;;  %p239_p4 = scmp.lt.s32.totalorder %s15_s10, %s15_s10 }
   0x9   :  { %p235_p3 = scmp.ne.s32.totalorder %s15_s10, %s234_s18  ;;  %p240_p5 = scmp.lt.s32.totalorder %s234_s18, %s234_s18 }
   0xb   :  { %p241_p6 = por %p240_p5, %p239_p4 }
   0xd   :  { %p242_p7 = pnand %p241_p6, %p235_p3 }
   0xf   :  { %245 = shalt.err (!%p242_p7)
}
  0x10   :  { %s273_s19 = smov 32   ;;  %s274_s20 = smov 2  }
  0x11   :  { %20 = dma.hbm_to_vmem [thread:$0]  %s388_s0, 512, %s15_s10, [#allocation3], %s273_s19, %s273_s19, %s274_s20  }
  0x12   :  { %268 = dma.done.wait [#allocation3], 512  }
  0x13   :  { %269 = vsyncadd [#allocation3], 4294966784  ;;  %vm170_vm0 = vcmask 254976   ;;  %s275_s23 = smov [#allocation5]   ;;  %v26_v0 = vld [vmem:[#allocation2] sm:$0x3] }
  0x14   :  { %s306_s24 = sshll.u32 %s275_s23, 4  ;;  %v204_v1 = vld [vmem:[%s389_s1] ss:$0 sm:$0xff]  ;;  %v27_v2 = vld [vmem:[#allocation2 + $0x2] sm:$0x3]  ;;  %s193_s24 = int_to_ptr.vmem [resolvable:$true] %s306_s24 }
  0x15   :  { %v154_v3 = vadd.f32 %v204_v1, %v26_v0  ;;  %v205_v4 = vld [vmem:[%s389_s1 + $0x1] ss:$0 sm:$0xff]  ;;  %v28_v5 = vld [vmem:[#allocation2 + $0x4] sm:$0x3]  ;;  %v206_v6 = vld [vmem:[%s389_s1 + $0x2] ss:$0 sm:$0xff]  ;;  %p251_p9 = scmp.lt.s32.totalorder %s193_s24, %s193_s24 }
  0x16   :  { %v155_v7 = vadd.f32 %v205_v4, %v27_v2  ;;  %v156_v8 = vadd.f32 %v206_v6, %v28_v5  ;;  %v29_v9 = vld [vmem:[#allocation2 + $0x6] sm:$0x3]  ;;  %v207_v10 = vld [vmem:[%s389_s1 + $0x3] ss:$0 sm:$0xff]  ;;  %v30_v11 = vld [vmem:[#allocation2 + $0x8] sm:$0x3] }
  0x17   :  { %171 = vst.msk [vmem:[#allocation5] sm:$0x3] %vm170_vm0, %v154_v3  ;;  %v157_v12 = vadd.f32 %v207_v10, %v29_v9  ;;  %v208_v13 = vld [vmem:[%s389_s1 + $0x4] ss:$0 sm:$0xff]  ;;  %v31_v14 = vld [vmem:[#allocation2 + $0xa] sm:$0x3] }
  0x18   :  { %v209_v15 = vld [vmem:[%s389_s1 + $0x5] ss:$0 sm:$0xff]  ;;  %172 = vst.msk [vmem:[#allocation5 + $0x2] sm:$0x3] %vm170_vm0, %v155_v7  ;;  %173 = vst.msk [vmem:[#allocation5 + $0x4] sm:$0x3] %vm170_vm0, %v156_v8  ;;  %v158_v16 = vadd.f32 %v208_v13, %v30_v11 }
  0x19   :  { %v159_v17 = vadd.f32 %v209_v15, %v31_v14  ;;  %v32_v18 = vld [vmem:[#allocation2 + $0xc] sm:$0x3]  ;;  %v210_v19 = vld [vmem:[%s389_s1 + $0x6] ss:$0 sm:$0xff]  ;;  %v33_v20 = vld [vmem:[#allocation2 + $0xe] sm:$0x3] }
  0x1a   :  { %174 = vst.msk [vmem:[#allocation5 + $0x6] sm:$0x3] %vm170_vm0, %v157_v12  ;;  %v160_v21 = vadd.f32 %v210_v19, %v32_v18  ;;  %v211_v22 = vld [vmem:[%s389_s1 + $0x7] ss:$0 sm:$0xff]  ;;  %v34_v23 = vld [vmem:[#allocation2 + $0x10] sm:$0x3] }
  0x1b   :  { %v212_v24 = vld [vmem:[%s389_s1 + $0x8] ss:$0 sm:$0xff]  ;;  %175 = vst.msk [vmem:[#allocation5 + $0x8] sm:$0x3] %vm170_vm0, %v158_v16  ;;  %176 = vst.msk [vmem:[#allocation5 + $0xa] sm:$0x3] %vm170_vm0, %v159_v17  ;;  %v161_v25 = vadd.f32 %v211_v22, %v33_v20 }
  0x1c   :  { %v162_v26 = vadd.f32 %v212_v24, %v34_v23  ;;  %v35_v27 = vld [vmem:[#allocation2 + $0x12] sm:$0x3]  ;;  %v213_v28 = vld [vmem:[%s389_s1 + $0x9] ss:$0 sm:$0xff]  ;;  %v36_v29 = vld [vmem:[#allocation2 + $0x14] sm:$0x3] }
  0x1d   :  { %177 = vst.msk [vmem:[#allocation5 + $0xc] sm:$0x3] %vm170_vm0, %v160_v21  ;;  %v163_v30 = vadd.f32 %v213_v28, %v35_v27  ;;  %v214_v31 = vld [vmem:[%s389_s1 + $0xa] ss:$0 sm:$0xff]  ;;  %v37_v32 = vld [vmem:[#allocation2 + $0x16] sm:$0x3] }
  0x1e   :  { %v215_v33 = vld [vmem:[%s389_s1 + $0xb] ss:$0 sm:$0xff]  ;;  %178 = vst.msk [vmem:[#allocation5 + $0xe] sm:$0x3] %vm170_vm0, %v161_v25  ;;  %179 = vst.msk [vmem:[#allocation5 + $0x10] sm:$0x3] %vm170_vm0, %v162_v26  ;;  %v164_v34 = vadd.f32 %v214_v31, %v36_v29 }
  0x1f   :  { %v165_v35 = vadd.f32 %v215_v33, %v37_v32  ;;  %v38_v36 = vld [vmem:[#allocation2 + $0x18] sm:$0x3]  ;;  %v216_v37 = vld [vmem:[%s389_s1 + $0xc] ss:$0 sm:$0xff]  ;;  %v39_v38 = vld [vmem:[#allocation2 + $0x1a] sm:$0x3] }
  0x20   :  { %180 = vst.msk [vmem:[#allocation5 + $0x12] sm:$0x3] %vm170_vm0, %v163_v30  ;;  %v166_v39 = vadd.f32 %v216_v37, %v38_v36  ;;  %v217_v40 = vld [vmem:[%s389_s1 + $0xd] ss:$0 sm:$0xff]  ;;  %v40_v41 = vld [vmem:[#allocation2 + $0x1c] sm:$0x3] }
  0x21   :  { %v218_v42 = vld [vmem:[%s389_s1 + $0xe] ss:$0 sm:$0xff]  ;;  %181 = vst.msk [vmem:[#allocation5 + $0x14] sm:$0x3] %vm170_vm0, %v164_v34  ;;  %182 = vst.msk [vmem:[#allocation5 + $0x16] sm:$0x3] %vm170_vm0, %v165_v35  ;;  %v167_v43 = vadd.f32 %v217_v40, %v39_v38 }
  0x22   :  { %v168_v44 = vadd.f32 %v218_v42, %v40_v41  ;;  %v41_v45 = vld [vmem:[#allocation2 + $0x1e] sm:$0x3]  ;;  %v219_v46 = vld [vmem:[%s389_s1 + $0xf] ss:$0 sm:$0xff]  ;;  %183 = vst.msk [vmem:[#allocation5 + $0x18] sm:$0x3] %vm170_vm0, %v166_v39 }
  0x23   :  { %v169_v47 = vadd.f32 %v219_v46, %v41_v45  ;;  %184 = vst.msk [vmem:[#allocation5 + $0x1a] sm:$0x3] %vm170_vm0, %v167_v43  ;;  %s246_s30 = scalar_lea.vmem %s193_s24, 512 }
  0x24   :  { %185 = vst.msk [vmem:[#allocation5 + $0x1c] sm:$0x3] %vm170_vm0, %v168_v44  ;;  %p247_p8 = scmp.ne.s32.totalorder %s193_s24, %s246_s30  ;;  %p252_p10 = scmp.lt.s32.totalorder %s246_s30, %s246_s30 }
  0x25   :  { %186 = vst.msk [vmem:[#allocation5 + $0x1e] sm:$0x3] %vm170_vm0, %v169_v47 }
  0x26   :  { %p253_p11 = por %p252_p10, %p251_p9 }
  0x28   :  { %p254_p12 = pnand %p253_p11, %p247_p8 }
  0x2a   :  { %257 = shalt.err (!%p254_p12)
}
  0x2b   :  { %s258_s1 = scalar_lea.hbm %s390_s2, 512 }
  0x2c   :  { %p259_p13 = scmp.ne.s32.totalorder %s390_s2, %s258_s1  ;;  %p262_p0 = scmp.lt.u32.totalorder %s258_s1, %s390_s2 }
  0x2e   :  { %p264_p1 = pnand %p262_p0, %p259_p13 }
  0x30   :  { %267 = shalt.err (!%p264_p1)
}
  0x31   :  { %198 = dma.vmem_to_hbm [thread:$0]  %s193_s24, 512, %s390_s2, [#allocation4], %s273_s19, %s273_s19, %s274_s20  }
  0x32   :  { %270 = dma.done.wait [#allocation4], 512  }
  0x33   :  { %271 = vsyncadd [#allocation4], 4294966784 }
  0x34   :  { %202 = vsyncpa [#allocation3], 1 }
  0x35   :  { %203 = vsyncpa [#allocation4], 1 }

</bundles_post_ra>
